<compile_context>
chip_gen: v7x
topology: tpu7x:2x2x1
jax: 0.10.0
libtpu: 0.0.40
codegen_flags: <defaults>
</compile_context>

<pallas_src>
import functools

import jax
import jax.numpy as jnp
from jax.experimental import pallas as pl
from jax.experimental.pallas import tpu as pltpu


# --------------------------------------------------------------------------
# Kernel
# --------------------------------------------------------------------------
def _actor_kernel(action_dim, max_action, low, high, compute_dtype,
                  state_ref, latent_ref, eps_ref,
                  w1l_ref, b1l_ref,
                  w1s_ref, w1z_ref, b1_ref,
                  w2_ref, b2_ref,
                  whead_ref, bhead_ref,
                  out_ref):
    f32 = jnp.float32

    state = state_ref[...].astype(compute_dtype)
    latent = latent_ref[...].astype(compute_dtype)

    # z = relu(l1_latent(latent))
    z = jnp.dot(latent, w1l_ref[...], preferred_element_type=f32) + b1l_ref[...]
    z = jnp.maximum(z, 0.0).astype(compute_dtype)

    # a = relu(l1(cat([state, z], 1)))  -- concat folded into two matmuls
    a = (jnp.dot(state, w1s_ref[...], preferred_element_type=f32)
         + jnp.dot(z, w1z_ref[...], preferred_element_type=f32)
         + b1_ref[...])
    a = jnp.maximum(a, 0.0).astype(compute_dtype)

    # a = relu(l2(a))
    a = jnp.dot(a, w2_ref[...], preferred_element_type=f32) + b2_ref[...]
    a = jnp.maximum(a, 0.0).astype(compute_dtype)

    # fused head: [l3_mu | l3_log_std]
    h = jnp.dot(a, whead_ref[...], preferred_element_type=f32) + bhead_ref[...]
    mu = max_action * jnp.tanh(h[:, :action_dim])
    ls = max_action * jnp.tanh(h[:, action_dim:])
    # soft_clamp
    ls = low + 0.5 * (high - low) * (jnp.tanh(ls) + 1.0)

    # dist.rsample() == mu + std * eps
    action = mu + jnp.exp(ls) * eps_ref[...]

    # single lane-dense output slab: [mu | log_std | action]
    out_ref[...] = jnp.concatenate([mu, ls, action], axis=1)


# --------------------------------------------------------------------------
# One-time parameter preparation (hoisted out of the forward hot path)
# --------------------------------------------------------------------------
def prepare_params(params, weight_dtype=jnp.float32):
    """Transpose / split / fuse torch-layout (out,in) weights once.

    weight_dtype: jnp.float32 (exact) or jnp.bfloat16 (halves weight DMA,
    MXU-native; accumulation stays f32).
    """
    S = params["w1_latent"].shape[0]          # l1_latent: (S, L) torch layout
    w1 = params["w1"].T                       # (2S, H1)
    return {
        "w1l": jnp.asarray(params["w1_latent"].T, weight_dtype),      # (L, S)
        "b1l": jnp.asarray(params["b1_latent"].reshape(1, -1), jnp.float32),
        "w1s": jnp.asarray(w1[:S, :], weight_dtype),                  # (S, H1)
        "w1z": jnp.asarray(w1[S:, :], weight_dtype),                  # (S, H1)
        "b1": jnp.asarray(params["b1"].reshape(1, -1), jnp.float32),
        "w2": jnp.asarray(params["w2"].T, weight_dtype),              # (H1, H2)
        "b2": jnp.asarray(params["b2"].reshape(1, -1), jnp.float32),
        # fused head: (H2, 2A), (1, 2A)
        "whead": jnp.asarray(
            jnp.concatenate([params["w3_mu"].T, params["w3_log_std"].T], axis=1),
            weight_dtype),
        "bhead": jnp.asarray(
            jnp.concatenate([params["b3_mu"], params["b3_log_std"]]).reshape(1, -1),
            jnp.float32),
        "action_dim": int(params["b3_mu"].shape[0]),
    }


# --------------------------------------------------------------------------
# Forward wrapper
# --------------------------------------------------------------------------
def latent_gaussian_actor_forward(state, latent, eps, prepared, max_action,
                                  log_std_bounds=(-5.0, 0.0), batch_block=None):
    """Pallas forward.  state:(B,S) latent:(B,L) eps:(B,A).

    prepared: output of prepare_params (call it ONCE, not per step).
    batch_block: if set (multiple of 8, dividing B), tiles the batch with a
    parallel grid axis (useful for large B / v7x dual TensorCore).
    """
    B = state.shape[0]
    A = prepared["action_dim"]
    weights = (prepared["w1l"], prepared["b1l"], prepared["w1s"], prepared["w1z"],
               prepared["b1"], prepared["w2"], prepared["b2"],
               prepared["whead"], prepared["bhead"])
    compute_dtype = prepared["w1l"].dtype

    kernel = functools.partial(
        _actor_kernel, A, float(max_action),
        float(log_std_bounds[0]), float(log_std_bounds[1]), compute_dtype)

    inputs = (state, latent, eps) + weights
    out_shape = jax.ShapeDtypeStruct((B, 3 * A), jnp.float32)

    if batch_block is None or batch_block >= B:
        # Tiny problem: everything resident in VMEM, single kernel invocation.
        vmem = pl.BlockSpec(memory_space=pltpu.MemorySpace.VMEM)
        out = pl.pallas_call(
            kernel,
            out_shape=out_shape,
            in_specs=[vmem] * len(inputs),
            out_specs=vmem,
        )(*inputs)
    else:
        assert B % batch_block == 0, "batch_block must divide batch size"
        grid = (B // batch_block,)

        def batch_spec(n_cols):
            return pl.BlockSpec((batch_block, n_cols), lambda i: (i, 0))

        def full_spec(arr):
            return pl.BlockSpec(arr.shape, lambda i: (0, 0))

        in_specs = ([batch_spec(state.shape[1]),
                     batch_spec(latent.shape[1]),
                     batch_spec(A)]
                    + [full_spec(w) for w in weights])
        out = pl.pallas_call(
            kernel,
            out_shape=out_shape,
            grid=grid,
            in_specs=in_specs,
            out_specs=pl.BlockSpec((batch_block, 3 * A), lambda i: (i, 0)),
            compiler_params=pltpu.CompilerParams(
                dimension_semantics=("parallel",)),
        )(*inputs)

    mu = out[:, :A]
    log_std = out[:, A:2 * A]
    action = out[:, 2 * A:]
    return mu, log_std, action


# --------------------------------------------------------------------------
# Synthetic parameters (torch nn.Linear layout) and pure-JAX reference
# --------------------------------------------------------------------------
def init_params(key, state_dim, action_dim, latent_dim, hidden=(256, 256)):
    keys = jax.random.split(key, 10)

    def lin(kw, kb, out_dim, in_dim):
        bound = 1.0 / jnp.sqrt(in_dim)
        w = jax.random.uniform(kw, (out_dim, in_dim), jnp.float32, -bound, bound)
        b = jax.random.uniform(kb, (out_dim,), jnp.float32, -bound, bound)
        return w, b

    w1l, b1l = lin(keys[0], keys[1], state_dim, latent_dim)
    w1, b1 = lin(keys[2], keys[3], hidden[0], 2 * state_dim)
    w2, b2 = lin(keys[4], keys[5], hidden[1], hidden[0])
    wmu, bmu = lin(keys[6], keys[7], action_dim, hidden[1])
    wls, bls = lin(keys[8], keys[9], action_dim, hidden[1])
    return {
        "w1_latent": w1l, "b1_latent": b1l,
        "w1": w1, "b1": b1,
        "w2": w2, "b2": b2,
        "w3_mu": wmu, "b3_mu": bmu,
        "w3_log_std": wls, "b3_log_std": bls,
    }


def reference_forward(state, latent, eps, params, max_action,
                      log_std_bounds=(-5.0, 0.0)):
    z = jax.nn.relu(latent @ params["w1_latent"].T + params["b1_latent"])
    sz = jnp.concatenate([state, z], axis=1)
    a = jax.nn.relu(sz @ params["w1"].T + params["b1"])
    a = jax.nn.relu(a @ params["w2"].T + params["b2"])
    mu = max_action * jnp.tanh(a @ params["w3_mu"].T + params["b3_mu"])
    ls = max_action * jnp.tanh(a @ params["w3_log_std"].T + params["b3_log_std"])
    low, high = log_std_bounds
    ls = low + 0.5 * (high - low) * (jnp.tanh(ls) + 1.0)
    action = mu + jnp.exp(ls) * eps
    return mu, ls, action


if __name__ == "__main__":
    batch, state_dim, action_dim, latent_dim = 16, 16, 8, 8
    hidden = (32, 32)
    max_action = 1.0

    key = jax.random.PRNGKey(0)
    k_params, k_state, k_latent, k_eps = jax.random.split(key, 4)

    params = init_params(k_params, state_dim, action_dim, latent_dim, hidden)
    state = jax.random.normal(k_state, (batch, state_dim), jnp.float32)
    latent = jax.random.normal(k_latent, (batch, latent_dim), jnp.float32)
    # TODO(synk): Gaussian noise for Normal.rsample is drawn host-side with
    # jax.random and passed in; an in-kernel pltpu.prng_* path is possible.
    eps = jax.random.normal(k_eps, (batch, action_dim), jnp.float32)

    # Reference.
    mu_r, ls_r, act_r = reference_forward(state, latent, eps, params, max_action)

    # One-time parameter prep (hoisted out of the forward hot path).
    prepared_f32 = prepare_params(params, jnp.float32)

    # 1) single-invocation path (everything VMEM resident).
    mu, log_std, action = latent_gaussian_actor_forward(
        state, latent, eps, prepared_f32, max_action)
    jax.block_until_ready((mu, log_std, action))
    assert jnp.allclose(mu, mu_r, atol=1e-5), "mu mismatch (f32)"
    assert jnp.allclose(log_std, ls_r, atol=1e-5), "log_std mismatch (f32)"
    assert jnp.allclose(action, act_r, atol=1e-5), "action mismatch (f32)"

    # 2) batch-parallel grid path (megacore-friendly on v7x).
    mu_g, ls_g, act_g = latent_gaussian_actor_forward(
        state, latent, eps, prepared_f32, max_action, batch_block=8)
    jax.block_until_ready((mu_g, ls_g, act_g))
    assert jnp.allclose(mu_g, mu_r, atol=1e-5), "mu mismatch (grid)"
    assert jnp.allclose(ls_g, ls_r, atol=1e-5), "log_std mismatch (grid)"
    assert jnp.allclose(act_g, act_r, atol=1e-5), "action mismatch (grid)"

    # 3) bf16 weight packing (halves weight DMA; f32 accumulation/elementwise).
    prepared_bf16 = prepare_params(params, jnp.bfloat16)
    mu_b, ls_b, act_b = latent_gaussian_actor_forward(
        state, latent, eps, prepared_bf16, max_action)
    jax.block_until_ready((mu_b, ls_b, act_b))
    assert jnp.allclose(mu_b, mu_r, atol=0.2), "mu mismatch (bf16)"
    assert jnp.allclose(ls_b, ls_r, atol=0.2), "log_std mismatch (bf16)"
    assert jnp.allclose(act_b, act_r, atol=0.2), "action mismatch (bf16)"

    print("KERNEL_OK")
</pallas_src>

<mosaic_0001>
module attributes {stable_mosaic.version = 11 : i64} {
  func.func @_actor_kernel(%arg0: memref<16x16xf32, #tpu.memory_space<vmem>>, %arg1: memref<16x8xf32, #tpu.memory_space<vmem>>, %arg2: memref<16x8xf32, #tpu.memory_space<vmem>>, %arg3: memref<8x16xf32, #tpu.memory_space<vmem>>, %arg4: memref<1x16xf32, #tpu.memory_space<vmem>>, %arg5: memref<16x32xf32, #tpu.memory_space<vmem>>, %arg6: memref<16x32xf32, #tpu.memory_space<vmem>>, %arg7: memref<1x32xf32, #tpu.memory_space<vmem>>, %arg8: memref<32x32xf32, #tpu.memory_space<vmem>>, %arg9: memref<1x32xf32, #tpu.memory_space<vmem>>, %arg10: memref<32x16xf32, #tpu.memory_space<vmem>>, %arg11: memref<1x16xf32, #tpu.memory_space<vmem>>, %arg12: memref<16x24xf32, #tpu.memory_space<vmem>>) attributes {dimension_semantics = [], scalar_prefetch = 0 : i64, scratch_operands = 0 : i64, tpu.core_type = #tpu.core_type<tc>} {
    %c0 = arith.constant 0 : index
    %c0_0 = arith.constant 0 : index
    %0 = vector.load %arg0[%c0, %c0_0] : memref<16x16xf32, #tpu.memory_space<vmem>>, vector<16x16xf32>
    %c0_1 = arith.constant 0 : index
    %c0_2 = arith.constant 0 : index
    %1 = vector.load %arg1[%c0_1, %c0_2] : memref<16x8xf32, #tpu.memory_space<vmem>>, vector<16x8xf32>
    %c0_3 = arith.constant 0 : index
    %c0_4 = arith.constant 0 : index
    %2 = vector.load %arg3[%c0_3, %c0_4] : memref<8x16xf32, #tpu.memory_space<vmem>>, vector<8x16xf32>
    %cst = arith.constant dense<0.000000e+00> : vector<16x16xf32>
    %3 = tpu.matmul %1, %2, %cst {dimension_numbers = #tpu.dot_dimension_numbers<[1], [0], [0], [1], [0, 0, 1, 1], [], []>} : vector<16x8xf32>, vector<8x16xf32>, vector<16x16xf32> -> vector<16x16xf32>
    %c0_5 = arith.constant 0 : index
    %c0_6 = arith.constant 0 : index
    %4 = vector.load %arg4[%c0_5, %c0_6] : memref<1x16xf32, #tpu.memory_space<vmem>>, vector<1x16xf32>
    %5 = vector.broadcast %4 : vector<1x16xf32> to vector<16x16xf32>
    %6 = arith.addf %3, %5 : vector<16x16xf32>
    %cst_7 = arith.constant 0.000000e+00 : f32
    %7 = vector.broadcast %cst_7 : f32 to vector<16x16xf32>
    %8 = arith.maximumf %6, %7 : vector<16x16xf32>
    %c0_8 = arith.constant 0 : index
    %c0_9 = arith.constant 0 : index
    %9 = vector.load %arg5[%c0_8, %c0_9] : memref<16x32xf32, #tpu.memory_space<vmem>>, vector<16x32xf32>
    %cst_10 = arith.constant dense<0.000000e+00> : vector<16x32xf32>
    %10 = tpu.matmul %0, %9, %cst_10 {dimension_numbers = #tpu.dot_dimension_numbers<[1], [0], [0], [1], [0, 0, 1, 1], [], []>} : vector<16x16xf32>, vector<16x32xf32>, vector<16x32xf32> -> vector<16x32xf32>
    %c0_11 = arith.constant 0 : index
    %c0_12 = arith.constant 0 : index
    %11 = vector.load %arg6[%c0_11, %c0_12] : memref<16x32xf32, #tpu.memory_space<vmem>>, vector<16x32xf32>
    %cst_13 = arith.constant dense<0.000000e+00> : vector<16x32xf32>
    %12 = tpu.matmul %8, %11, %cst_13 {dimension_numbers = #tpu.dot_dimension_numbers<[1], [0], [0], [1], [0, 0, 1, 1], [], []>} : vector<16x16xf32>, vector<16x32xf32>, vector<16x32xf32> -> vector<16x32xf32>
    %13 = arith.addf %10, %12 : vector<16x32xf32>
    %c0_14 = arith.constant 0 : index
    %c0_15 = arith.constant 0 : index
    %14 = vector.load %arg7[%c0_14, %c0_15] : memref<1x32xf32, #tpu.memory_space<vmem>>, vector<1x32xf32>
    %15 = vector.broadcast %14 : vector<1x32xf32> to vector<16x32xf32>
    %16 = arith.addf %13, %15 : vector<16x32xf32>
    %cst_16 = arith.constant 0.000000e+00 : f32
    %17 = vector.broadcast %cst_16 : f32 to vector<16x32xf32>
    %18 = arith.maximumf %16, %17 : vector<16x32xf32>
    %c0_17 = arith.constant 0 : index
    %c0_18 = arith.constant 0 : index
    %19 = vector.load %arg8[%c0_17, %c0_18] : memref<32x32xf32, #tpu.memory_space<vmem>>, vector<32x32xf32>
    %cst_19 = arith.constant dense<0.000000e+00> : vector<16x32xf32>
    %20 = tpu.matmul %18, %19, %cst_19 {dimension_numbers = #tpu.dot_dimension_numbers<[1], [0], [0], [1], [0, 0, 1, 1], [], []>} : vector<16x32xf32>, vector<32x32xf32>, vector<16x32xf32> -> vector<16x32xf32>
    %c0_20 = arith.constant 0 : index
    %c0_21 = arith.constant 0 : index
    %21 = vector.load %arg9[%c0_20, %c0_21] : memref<1x32xf32, #tpu.memory_space<vmem>>, vector<1x32xf32>
    %22 = vector.broadcast %21 : vector<1x32xf32> to vector<16x32xf32>
    %23 = arith.addf %20, %22 : vector<16x32xf32>
    %cst_22 = arith.constant 0.000000e+00 : f32
    %24 = vector.broadcast %cst_22 : f32 to vector<16x32xf32>
    %25 = arith.maximumf %23, %24 : vector<16x32xf32>
    %c0_23 = arith.constant 0 : index
    %c0_24 = arith.constant 0 : index
    %26 = vector.load %arg10[%c0_23, %c0_24] : memref<32x16xf32, #tpu.memory_space<vmem>>, vector<32x16xf32>
    %cst_25 = arith.constant dense<0.000000e+00> : vector<16x16xf32>
    %27 = tpu.matmul %25, %26, %cst_25 {dimension_numbers = #tpu.dot_dimension_numbers<[1], [0], [0], [1], [0, 0, 1, 1], [], []>} : vector<16x32xf32>, vector<32x16xf32>, vector<16x16xf32> -> vector<16x16xf32>
    %c0_26 = arith.constant 0 : index
    %c0_27 = arith.constant 0 : index
    %28 = vector.load %arg11[%c0_26, %c0_27] : memref<1x16xf32, #tpu.memory_space<vmem>>, vector<1x16xf32>
    %29 = vector.broadcast %28 : vector<1x16xf32> to vector<16x16xf32>
    %30 = arith.addf %27, %29 : vector<16x16xf32>
    %31 = vector.extract_strided_slice %30 {offsets = [0, 0], sizes = [16, 8], strides = [1, 1]} : vector<16x16xf32> to vector<16x8xf32>
    %32 = math.tanh %31 : vector<16x8xf32>
    %cst_28 = arith.constant 1.000000e+00 : f32
    %33 = vector.broadcast %cst_28 : f32 to vector<16x8xf32>
    %34 = arith.mulf %33, %32 : vector<16x8xf32>
    %35 = vector.extract_strided_slice %30 {offsets = [0, 8], sizes = [16, 8], strides = [1, 1]} : vector<16x16xf32> to vector<16x8xf32>
    %36 = math.tanh %35 : vector<16x8xf32>
    %cst_29 = arith.constant 1.000000e+00 : f32
    %37 = vector.broadcast %cst_29 : f32 to vector<16x8xf32>
    %38 = arith.mulf %37, %36 : vector<16x8xf32>
    %39 = math.tanh %38 : vector<16x8xf32>
    %cst_30 = arith.constant 1.000000e+00 : f32
    %40 = vector.broadcast %cst_30 : f32 to vector<16x8xf32>
    %41 = arith.addf %39, %40 : vector<16x8xf32>
    %cst_31 = arith.constant 2.500000e+00 : f32
    %42 = vector.broadcast %cst_31 : f32 to vector<16x8xf32>
    %43 = arith.mulf %42, %41 : vector<16x8xf32>
    %cst_32 = arith.constant -5.000000e+00 : f32
    %44 = vector.broadcast %cst_32 : f32 to vector<16x8xf32>
    %45 = arith.addf %44, %43 : vector<16x8xf32>
    %46 = math.exp %45 : vector<16x8xf32>
    %c0_33 = arith.constant 0 : index
    %c0_34 = arith.constant 0 : index
    %47 = vector.load %arg2[%c0_33, %c0_34] : memref<16x8xf32, #tpu.memory_space<vmem>>, vector<16x8xf32>
    %48 = arith.mulf %46, %47 : vector<16x8xf32>
    %49 = arith.addf %34, %48 : vector<16x8xf32>
    %50 = tpu.concatenate %34, %45, %49 in 1 : vector<16x8xf32>, vector<16x8xf32>, vector<16x8xf32> -> vector<16x24xf32>
    %c0_35 = arith.constant 0 : index
    %c0_36 = arith.constant 0 : index
    %51 = vector.load %arg12[%c0_35, %c0_36] : memref<16x24xf32, #tpu.memory_space<vmem>>, vector<16x24xf32>
    tpu.vector_store %arg12[%c0_35, %c0_36], %50 {strides = array<i32>} : memref<16x24xf32, #tpu.memory_space<vmem>>, vector<16x24xf32>,
    return
  }
}

</mosaic_0001>

<bundles_post_ra>
// kernel: tpu_custom_call.1
= control target key start
LH: loop header
LB: loop body
LE: loop exit
PB: predicated region body
PF: predicated region fallthrough
CT: control target
= control target key end

     0   :  { %vm54_vm0 = vcmask 64512   ;;  %s883_s0 = inlined_call_operand.vmem [shape: f32[16,16], index: 0, kind: input, shape index: {}]   ;;  %s884_s1 = inlined_call_operand.vmem [shape: f32[16,8], index: 1, kind: input, shape index: {}]   ;;  %s885_s2 = inlined_call_operand.vmem [shape: f32[16,8], index: 2, kind: input, shape index: {}]   ;;  %s886_s3 = inlined_call_operand.vmem [shape: f32[8,16], index: 3, kind: input, shape index: {}]   ;;  %s887_s4 = inlined_call_operand.vmem [shape: f32[1,16], index: 4, kind: input, shape index: {}]   ;;  %s888_s5 = inlined_call_operand.vmem [shape: f32[16,32], index: 5, kind: input, shape index: {}]   ;;  %s889_s6 = inlined_call_operand.vmem [shape: f32[16,32], index: 6, kind: input, shape index: {}]   ;;  %s890_s7 = inlined_call_operand.vmem [shape: f32[1,32], index: 7, kind: input, shape index: {}]   ;;  %s891_s8 = inlined_call_operand.vmem [shape: f32[32,32], index: 8, kind: input, shape index: {}]   ;;  %s892_s9 = inlined_call_operand.vmem [shape: f32[1,32], index: 9, kind: input, shape index: {}]   ;;  %s893_s10 = inlined_call_operand.vmem [shape: f32[32,16], index: 10, kind: input, shape index: {}]   ;;  %s894_s11 = inlined_call_operand.vmem [shape: f32[1,16], index: 11, kind: input, shape index: {}]   ;;  %s895_s12 = inlined_call_operand.hbm [shape: f32[16,24], index: 12, kind: output, shape index: {}]  }
   0x1   :  { %v46_v0 = vld [vmem:[%s886_s3] sm:$0xff]  ;;  %v45_v2 = vld [vmem:[%s884_s1 + $0x8] sm:$0xff] }
   0x2   :  { %v44_v1 = vld [vmem:[%s884_s1] sm:$0xff]  ;;  %607 = vmatprep.subr.mxu0 %v46_v0 }
   0x3   :  { %609 = vmatprep.mubr.msk.f32.mxu0 %vm54_vm0, %v44_v1 }
   0x4   :  { %17 = vsyncpa [#allocation3], 0  ;;  %608 = vmatpush3.msra.mxu0 %v46_v0  ;;  %v138_v3 = vld [vmem:[%s888_s5] sm:$0xff]  ;;  %v139_v4 = vld [vmem:[%s888_s5 + $0x8] sm:$0xff]  ;;  %vm142_vm1 = vcmask 130048   ;;  %vm327_vm2 = vcmask 261120  }
   0x5   :  { %610 = vmatmul.mubr.msk.f32.vlgmr.msra.gmra.mrb[0].mxu0 %vm54_vm0, %v45_v2  ;;  %v140_v5 = vld [vmem:[%s889_s6] sm:$0xff]  ;;  %v141_v6 = vld [vmem:[%s889_s6 + $0x8] sm:$0xff]  ;;  %v652_v7 = vpack.c.bf16 %v139_v4, %v138_v3  ;;  %v318_v23 = vld [vmem:[%s891_s8 + $0x10] sm:$0xff]  ;;  %s715_s15 = smov 8   ;;  %vm551_vm3 = vcmask 195584  }
   0x6   :  { %v648_v8 = vpack.c.bf16 %v141_v6, %v140_v5  ;;  %v42_v9 = vld [vmem:[%s883_s0] sm:$0xff]  ;;  %v43_v10 = vld [vmem:[%s883_s0 + $0x8] sm:$0xff]  ;;  %v319_v24 = vld [vmem:[%s891_s8 + $0x18] sm:$0xff] }
   0x7   :  { %653 = vmatprep.subr.bf16.mxu1 %v652_v7  ;;  %623 = vmatprep.mubr.msk.f32.mxu1 %vm142_vm1, %v42_v9  ;;  %v570_v11 = vld [vmem:[%s887_s4] ss:$0 sm:$0xff]  ;;  %v317_v19 = vld [vmem:[%s891_s8 + $0x8] sm:$0xff]  ;;  %v660_v25 = vpack.c.bf16 %v319_v24, %v318_v23  ;;  %v413_v38 = vld [vmem:[%s893_s10 + $0x10] sm:$0xff] }
   0x8   :  { %649 = vmatprep.subr.bf16.mxu0 %v648_v8  ;;  %655 = vmatpush3.bf16.msra.mxu1 %v652_v7  ;;  %v316_v18 = vld [vmem:[%s891_s8] sm:$0xff]  ;;  %v412_v27 = vld [vmem:[%s893_s10 + $0x8] sm:$0xff]  ;;  %v414_v39 = vld [vmem:[%s893_s10 + $0x18] sm:$0xff] }
   0x9   :  { %651 = vmatpush3.bf16.msra.mxu0 %v648_v8  ;;  %v656_v21 = vpack.c.bf16 %v317_v19, %v316_v18  ;;  %v411_v26 = vld [vmem:[%s893_s10] sm:$0xff]  ;;  %v668_v40 = vpack.c.bf16 %v414_v39, %v413_v38  ;;  %v518_v42 = vld [vmem:[%s885_s2 + $0x8] sm:$0xff] }
   0xa   :  { %v664_v28 = vpack.c.bf16 %v412_v27, %v411_v26  ;;  %v577_v30 = vld [vmem:[%s890_s7] ss:$0 sm:$0xff] }
   0xb   :  { %624 = vmatmul.mubr.msk.f32.vlgmr.msra.gmra.mrb[0].mxu1 %vm142_vm1, %v43_v10  ;;  %657 = vmatprep.subr.bf16.mxu0 %v656_v21  ;;  %v517_v41 = vld [vmem:[%s885_s2] sm:$0xff]  ;;  %s716_s2 = smov 120  }
   0xc   :  { %665 = vmatprep.subr.bf16.mxu1 %v664_v28  ;;  %521 = vrot.lane.b32.xlu0 %v517_v41, %s715_s15  ;;  %v578_v43 = vld [vmem:[%s892_s9] ss:$0 sm:$0xff]  ;;  %s717_s9 = smov 16  }
   0xd   :  { %667 = vmatpush3.bf16.msra.mxu1 %v664_v28  ;;  %v581_v50 = vld [vmem:[%s894_s11] ss:$0 sm:$0xff]  ;;  %s718_s11 = smov [#allocation2]  }
   0xe   :  { %669 = vmatprep.subr.bf16.mxu1 %v668_v40  ;;  %s559_s19 = sshll.u32 %s718_s11, 4  ;;  %s560_s19 = int_to_ptr.vmem [resolvable:$true] %s559_s19 }
   0xf   :  { %s691_s20 = scalar_lea.vmem %s560_s19, 256  ;;  %p696_p1 = scmp.lt.s32.totalorder %s560_s19, %s560_s19 }
  0x10   :  { %523 = vrot.lane.b32.xlu0 %v518_v42, %s715_s15  ;;  %p692_p0 = scmp.ne.s32.totalorder %s560_s19, %s691_s20  ;;  %p697_p2 = scmp.lt.s32.totalorder %s691_s20, %s691_s20 }
  0x11   :  { %671 = vmatpush3.bf16.msra.mxu1 %v668_v40 }
  0x12   :  { %p698_p3 = por %p697_p2, %p696_p1 }
  0x14   :  { %p699_p4 = pnand %p698_p3, %p692_p0 }
  0x7e   :  { %v522_v3 = vpop.permute.xlu0 %521 }
  0x82   :  { %v524_v7 = vpop.permute.xlu0 %523 }
  0xd8   :  { %v611_v12 = vpop.f32.mrb[0].mxu0 }
  0xd9   :  { %v133_v13 = vadd.f32 %v611_v12, %v570_v11  ;;  %v127_v14 = vpop.f32.mrb[1].mxu0 }
  0xda   :  { %v128_v15 = vadd.f32 %v570_v11, %v127_v14 }
  0xdb   :  { %v137_v17 = vmax.f32 %v133_v13, 0.0 }
  0xdc   :  { %v136_v16 = vmax.f32 %v128_v15, 0.0 }
  0xde   :  { %616 = vmatprep.mubr.msk.f32.mxu0 %vm142_vm1, %v136_v16  ;;  %v625_v20 = vpop.f32.mrb[0].mxu1 }
  0xdf   :  { %617 = vmatmul.mubr.msk.f32.vlgmr.msra.gmra.mrb[2].mxu0 %vm142_vm1, %v137_v17  ;;  %v296_v22 = vpop.f32.mrb[1].mxu1 }
  0xe0   :  { %659 = vmatpush3.bf16.msra.mxu0 %v656_v21 }
  0xe1   :  { %661 = vmatprep.subr.bf16.mxu0 %v660_v25 }
  0xe4   :  { %663 = vmatpush3.bf16.msra.mxu0 %v660_v25 }
 0x1b2   :  { %v618_v29 = vpop.f32.mrb[2].mxu0 }
 0x1b3   :  { %v302_v31 = vadd.f32 %v625_v20, %v618_v29  ;;  %v215_v32 = vpop.f32.mrb[3].mxu0 }
 0x1b4   :  { %v297_v33 = vadd.f32 %v296_v22, %v215_v32 }
 0x1b5   :  { %v313_v34 = vadd.f32 %v577_v30, %v302_v31 }
 0x1b6   :  { %v312_v35 = vadd.f32 %v577_v30, %v297_v33 }
 0x1b7   :  { %v315_v37 = vmax.f32 %v313_v34, 0.0 }
 0x1b8   :  { %v314_v36 = vmax.f32 %v312_v35, 0.0 }
 0x1ba   :  { %634 = vmatprep.mubr.msk.f32.mxu0 %vm327_vm2, %v314_v36 }
 0x1bb   :  { %635 = vmatmul.mubr.msk.f32.vlgmr.msra.gmra.mrb[4].mxu0 %vm327_vm2, %v315_v37 }
 0x28e   :  { %v636_v44 = vpop.f32.mrb[4].mxu0 }
 0x28f   :  { %v406_v45 = vadd.f32 %v636_v44, %v578_v43  ;;  %v400_v46 = vpop.f32.mrb[5].mxu0 }
 0x290   :  { %v401_v47 = vadd.f32 %v578_v43, %v400_v46 }
 0x291   :  { %v410_v49 = vmax.f32 %v406_v45, 0.0 }
 0x292   :  { %v409_v48 = vmax.f32 %v401_v47, 0.0 }
 0x294   :  { %645 = vmatprep.mubr.msk.f32.mxu1 %vm327_vm2, %v409_v48 }
 0x295   :  { %646 = vmatmul.mubr.msk.f32.vlgmr.msra.gmra.mrb[2].mxu1 %vm327_vm2, %v410_v49 }
 0x368   :  { %v647_v51 = vpop.f32.mrb[2].mxu1 }
 0x369   :  { %v500_v52 = vadd.f32 %v647_v51, %v581_v50  ;;  %v494_v53 = vpop.f32.mrb[3].mxu1 }
 0x36a   :  { %v495_v54 = vadd.f32 %v581_v50, %v494_v53 }
 0x36b   :  { %679 = vtanh.f32 %v500_v52 }
 0x36c   :  { %681 = vtanh.f32 %v495_v54 }
 0x375   :  { %v680_v55 = vpop.eup %679 }
 0x376   :  { %v682_v56 = vpop.eup %681  ;;  %683 = vtanh.f32 %v680_v55 }
 0x377   :  { %685 = vtanh.f32 %v682_v56 }
 0x380   :  { %v684_v57 = vpop.eup %683 }
 0x381   :  { %v686_v58 = vpop.eup %685  ;;  %v508_v59 = vadd.f32 1.0, %v684_v57 }
 0x382   :  { %v507_v60 = vadd.f32 1.0, %v686_v58 }
 0x383   :  { %v510_v61 = vmul.f32 2.5, %v508_v59 }
 0x384   :  { %v509_v62 = vmul.f32 2.5, %v507_v60 }
 0x385   :  { %v512_v63 = vadd.f32 -5.0, %v510_v61 }
 0x386   :  { %v511_v0 = vadd.f32 -5.0, %v509_v62 }
 0x387   :  { %v515_v2 = vmul.f32 1.442695, %v512_v63  ;;  %v548_v16 = vsel %vm54_vm0, %v680_v55, %v512_v63 }
 0x388   :  { %v513_v1 = vmul.f32 1.442695, %v511_v0  ;;  %v547_v13 = vsel %vm54_vm0, %v682_v56, %v511_v0 }
 0x38a   :  { %687 = vpow2.f32 %v513_v1 }
 0x38b   :  { %689 = vpow2.f32 %v515_v2 }
 0x394   :  { %v688_v4 = vpop.eup %687 }
 0x395   :  { %v527_v5 = vmul.f32 %v688_v4, %v522_v3  ;;  %v690_v6 = vpop.eup %689 }
 0x396   :  { %v528_v8 = vmul.f32 %v690_v6, %v524_v7 }
 0x397   :  { %531 = vrot.lane.b32.xlu1 %v527_v5, %s716_s2 }
 0x39b   :  { %533 = vrot.lane.b32.xlu1 %v528_v8, %s716_s2 }
 0x409   :  { %v532_v9 = vpop.permute.xlu1 %531 }
 0x40a   :  { %v537_v10 = vadd.f32 %v682_v56, %v532_v9 }
 0x40c   :  { %541 = vrot.lane.b32.xlu0 %v537_v10, %s717_s9 }
 0x40d   :  { %v534_v11 = vpop.permute.xlu1 %533 }
 0x40e   :  { %v538_v12 = vadd.f32 %v680_v55, %v534_v11 }
 0x410   :  { %543 = vrot.lane.b32.xlu1 %v538_v12, %s717_s9 }
 0x47e   :  { %v542_v14 = vpop.permute.xlu0 %541 }
 0x47f   :  { %v549_v15 = vsel %vm142_vm1, %v547_v13, %v542_v14 }
 0x480   :  { %552 = vst.msk [vmem:[#allocation2] sm:$0xff] %vm551_vm3, %v549_v15 }
 0x482   :  { %v544_v17 = vpop.permute.xlu1 %543 }
 0x483   :  { %v550_v18 = vsel %vm142_vm1, %v548_v16, %v544_v17 }
 0x484   :  { %553 = vst.msk [vmem:[#allocation2 + $0x8] sm:$0xff] %vm551_vm3, %v550_v18 }
 0x485   :  { %702 = shalt.err (!%p699_p4)
}
 0x486   :  { %s703_s4 = scalar_lea.hbm %s895_s12, 256 }
 0x487   :  { %p704_p5 = scmp.ne.s32.totalorder %s895_s12, %s703_s4  ;;  %p707_p6 = scmp.lt.u32.totalorder %s703_s4, %s895_s12 }
 0x489   :  { %p709_p7 = pnand %p707_p6, %p704_p5 }
 0x48b   :  { %712 = shalt.err (!%p709_p7)
}
 0x48c   :  { %s719_s26 = smov 128  }
 0x48d   :  { %565 = dma.vmem_to_hbm [thread:$0]  %s560_s19, 256, %s895_s12, [#allocation3], %s719_s26, %s719_s26, %s715_s15  }
 0x48e   :  { %713 = dma.done.wait [#allocation3], 256  }
 0x48f   :  { %714 = vsyncadd [#allocation3], 4294967040 }
 0x490   :  { %569 = vsyncpa [#allocation3], 1 }

</bundles_post_ra>
